<compile_context>
chip_gen: v5e
topology: v5e:2x2
jax: 0.10.0
libtpu: 0.0.40
codegen_flags: <defaults>
</compile_context>

<pallas_src>
import functools
import math

import numpy as np

import jax
import jax.numpy as jnp
from jax import lax
from jax.experimental import pallas as pl
from jax.experimental.pallas import tpu as pltpu  # noqa: F401  (TPU backend)

# ----------------------------------------------------------------------------
# Synthetic, deterministic "args" (the module has no learned parameters,
# only constants derived from args).
# ----------------------------------------------------------------------------
FASTMODE = True
EPS = 1.0
NUM_COMPOSITIONS = 4
BUCKETS_HALF = 64            # must be even
FACTOR = 1.05                # must be > 1
# TODO(synk): utils.get_good_factor is not provided; use FACTOR as-is.
# TODO(synk): torch_utils.customCeil/customEqual unavailable; modelled as
#             jnp.ceil + exact (f32) equality.

N = 2 * BUCKETS_HALF                                  # self.n
N_LIVE = N // 2                                       # live buckets after swap
L = math.log(FACTOR) * 2 * BUCKETS_HALF               # self.L
LAMBDA = L / 2.0                                      # self._lambda
DELTA_X = 2.0 * L / N                                 # self.delta_x
INV_DELTA_X = 1.0 / DELTA_X
MIN_INDEX = int(math.floor(N * (L + EPS) / (2.0 * L)))
ERROR_FACTOR = math.exp(-LAMBDA * L) / (1.0 - math.exp(-2.0 * LAMBDA * L))

# The output-side fold below (tail reads only the swapped second half) requires
# MIN_INDEX >= n/2, i.e. eps >= 0.
assert MIN_INDEX >= N // 2, "fold requires eps >= 0 so that MIN_INDEX >= n/2"

# ----------------------------------------------------------------------------
# Constant tables, built ONCE on the host (hoisted off the per-call path):
#   BF_FOLD : folded forward DFT basis for the duplicated ("swapped") pb
#             BF_FOLD[j] = [cos|-sin][j] + [cos|-sin][j+64]        (n/2, 2n)
#   V_ROW   : inverse DFT + swap + tail mask/weights folded into one row
#             V_ROW = (BI[:, :n/2] @ w_shift)^T                    (1, 2n)
# ----------------------------------------------------------------------------
_k = np.arange(N, dtype=np.float64)
_theta = 2.0 * np.pi * np.outer(_k, _k) / N
_COS = np.cos(_theta)
_SIN = np.sin(_theta)

_BF_full = np.concatenate([_COS, -_SIN], axis=1)            # (n, 2n) forward
_BI_full = np.concatenate([_COS, -_SIN], axis=0) / N        # (2n, n) inverse

BF_FOLD = jnp.asarray(_BF_full[:N_LIVE] + _BF_full[N_LIVE:], dtype=jnp.float32)

_disc = np.linspace(-L, L - DELTA_X, N)                     # discretization
_w_full = (1.0 - np.exp(EPS - _disc)) * (np.arange(N) > MIN_INDEX)
_w_shift = _w_full[N_LIVE:]                                 # weights at i >= n/2
V_ROW = jnp.asarray((_BI_full[:, :N_LIVE] @ _w_shift).reshape(1, 2 * N),
                    dtype=jnp.float32)


def _complex_int_pow(xr, xi, c):
    """(xr + i*xi) ** c for a compile-time integer c >= 1 (binary exponentiation)."""
    res = None
    br, bi = xr, xi
    while c > 0:
        if c & 1:
            if res is None:
                res = (br, bi)
            else:
                rr, ri = res
                res = (rr * br - ri * bi, rr * bi + ri * br)
        c >>= 1
        if c:
            br, bi = br * br - bi * bi, 2.0 * br * bi
    return res


# ----------------------------------------------------------------------------
# Fused kernel: both FFT-delta tails + both logsumexp alphas in one launch.
#   pab_ref  : (2, K)        rows = [p_A, p_B]      (lane-dense)
#   pabt_ref : (K, 2)        cols = [p_A, p_B]      (sublane-major, for buckets)
#   bff_ref  : (n/2, 2n)     folded forward DFT basis
#   v_ref    : (1, 2n)       folded inverse-DFT + swap + tail weights
#   out_ref  : (1, 128)  ->  [tail, tail_dual, alpha_plus, alpha_minus, 0...]
# ----------------------------------------------------------------------------
def _fused_kernel(pab_ref, pabt_ref, bff_ref, v_ref, out_ref, *,
                  big_l, inv_dx, n_live, num_comp, lam):
    pab = pab_ref[...]                                 # (2, K)
    pabt = pabt_ref[...]                               # (K, 2)
    K = pab.shape[1]

    # ---- lane-dense log math + computeError logsumexps (alpha_plus/minus) --
    logs = jnp.log(pab)                                # (2, K)
    log_a = logs[0:1, :]                               # (1, K)  log p_A
    log_b = logs[1:2, :]                               # (1, K)  log p_B
    priv = log_a - log_b                               # (1, K)  privacy loss
    a = priv * lam + log_a
    b = (-priv) * lam + log_b
    ma = jnp.max(a, axis=1, keepdims=True)             # (1, 1)
    mb = jnp.max(b, axis=1, keepdims=True)
    ap = ma + jnp.log(jnp.sum(jnp.exp(a - ma), axis=1, keepdims=True))
    am = mb + jnp.log(jnp.sum(jnp.exp(b - mb), axis=1, keepdims=True))

    # ---- bucket indices in sublane-major (K, 1) layout, kept in f32 --------
    logst = jnp.log(pabt)                              # (K, 2)
    privt = logst[:, 0:1] - logst[:, 1:2]              # (K, 1)  privacy loss
    idx0 = jnp.ceil((big_l + privt) * inv_dx)          # (K, 1)  primal buckets
    idx1 = jnp.ceil((big_l - privt) * inv_dx)          # (K, 1)  dual buckets

    # ---- combined one-hot, K-major, lane-iota; single MXU push -------------
    # Only buckets [0, n_live) survive the aliasing swap, so the one-hot spans
    # n_live lanes per distribution: primal in lanes [0,64), dual in [64,128).
    lane = lax.broadcasted_iota(jnp.int32, (K, 2 * n_live), 1).astype(jnp.float32)
    target = jnp.where(lane < n_live, idx0, idx1 + n_live)          # (K, 128)
    onehot = (lane == target).astype(jnp.float32)                   # (K, 128)

    hist = jnp.dot(pab, onehot, preferred_element_type=jnp.float32)  # (2, 128)
    # row 0 wants the primal buckets (lanes [0,64)), row 1 the dual (lanes [64,128))
    srow = lax.broadcasted_iota(jnp.int32, (2, n_live), 0)
    h = jnp.where(srow == 0, hist[:, :n_live], hist[:, n_live:])     # (2, 64)

    # ---- forward DFT with folded basis (swap folded in), composition -------
    x = jnp.dot(h, bff_ref[...], preferred_element_type=jnp.float32)  # (2, 2n)
    n = x.shape[1] // 2
    xr = x[:, :n]                                                     # (2, n)
    xi = x[:, n:]                                                     # (2, n)
    yr, yi = _complex_int_pow(xr, xi, num_comp)        # X ** C, repeated squaring
    y = jnp.concatenate([yr, yi], axis=1)                             # (2, 2n)

    # ---- inverse DFT + swap + mask + tail sum, folded into one row vector --
    tails = jnp.sum(y * v_ref[...], axis=1, keepdims=True)            # (2, 1)

    # ---- pack [tail, tail_dual, ap, am] into one lane-dense output row -----
    lane_out = lax.broadcasted_iota(jnp.int32, out_ref.shape, 1)
    out_ref[...] = (jnp.where(lane_out == 0, tails[0:1, :], 0.0)
                    + jnp.where(lane_out == 1, tails[1:2, :], 0.0)
                    + jnp.where(lane_out == 2, ap, 0.0)
                    + jnp.where(lane_out == 3, am, 0.0))


# ----------------------------------------------------------------------------
# Wrappers
# ----------------------------------------------------------------------------
@jax.jit
def _forward_core(p_A_slice, p_B_slice, dist_events):
    p_a = p_A_slice.astype(jnp.float32)
    p_b = p_B_slice.astype(jnp.float32)
    pab = jnp.stack([p_a, p_b], axis=0)                 # (2, K)  lane-dense
    pabt = jnp.stack([p_a, p_b], axis=1)                # (K, 2)  sublane-major

    kern = functools.partial(_fused_kernel, big_l=L, inv_dx=INV_DELTA_X,
                             n_live=N_LIVE, num_comp=NUM_COMPOSITIONS,
                             lam=LAMBDA)
    packed = pl.pallas_call(
        kern,
        out_shape=jax.ShapeDtypeStruct((1, 128), jnp.float32),
    )(pab, pabt, BF_FOLD, V_ROW)

    tail = packed[0, 0]
    tail_dual = packed[0, 1]
    ap = packed[0, 2]
    am = packed[0, 3]

    C = NUM_COMPOSITIONS
    exp_ap = jnp.exp(ap)
    exp_am = jnp.exp(am)
    em1_ap = jnp.expm1(ap)                              # exp(ap) - 1, stable
    em1_am = jnp.expm1(am)
    T1 = (2.0 * jnp.exp((C + 1) * ap) - jnp.exp(C * ap) - exp_ap) / em1_ap
    T2 = (jnp.exp((C + 1) * am) - exp_am) / em1_am
    error = (T1 + T2) * ERROR_FACTOR
    # computeError(p_B, p_A) just swaps alpha_plus / alpha_minus.
    T1d = (2.0 * jnp.exp((C + 1) * am) - jnp.exp(C * am) - exp_am) / em1_am
    T2d = (jnp.exp((C + 1) * ap) - exp_ap) / em1_ap
    error_dual = (T1d + T2d) * ERROR_FACTOR

    dist_events_comp_local = 1.0 - jnp.power(1.0 - dist_events, C)
    pb_delta = dist_events_comp_local + tail + error
    pb_delta_dual = dist_events_comp_local + tail_dual + error_dual
    return pb_delta, pb_delta_dual


def compute_fft_delta_forward(p_A_slice, p_B_slice, dist_events,
                              dist_events_dual, step):
    del step, dist_events_dual  # dual call also uses dist_events (as in torch)

    pb_delta, pb_delta_dual = _forward_core(p_A_slice, p_B_slice,
                                            jnp.float32(dist_events))

    # self.dist_events_comp / self.dist_events_comp_dual are never re-assigned
    # in the torch module; they stay at their __init__ value of 0.
    dist_events_comp = jnp.float32(0.0)
    dist_events_comp_dual = jnp.float32(0.0)

    if FASTMODE:
        debug_tensors = {}
    else:
        priv = jnp.log(p_A_slice) - jnp.log(p_B_slice)
        debug_tensors = {"privacy_loss": priv, "privacy_loss_dual": -priv}

    return (pb_delta, pb_delta_dual, dist_events_comp, dist_events_comp_dual,
            pb_delta + dist_events_comp, debug_tensors)


if __name__ == "__main__":
    key = jax.random.PRNGKey(0)
    k1, k2 = jax.random.split(key)
    K = 256
    p_A = jax.nn.softmax(0.1 * jax.random.normal(k1, (K,), dtype=jnp.float32))
    p_B = jax.nn.softmax(0.1 * jax.random.normal(k2, (K,), dtype=jnp.float32))
    dist_events = jnp.float32(0.01)
    dist_events_dual = jnp.float32(0.005)

    out = compute_fft_delta_forward(p_A, p_B, dist_events, dist_events_dual,
                                    step=0)
    jax.block_until_ready((out[0], out[1], out[2], out[3], out[4]))
    assert jnp.isfinite(out[0]) and jnp.isfinite(out[1])
    print("KERNEL_OK")
</pallas_src>

<mosaic_0001>
module attributes {stable_mosaic.version = 11 : i64} {
  func.func @_fused_kernel(%arg0: memref<2x256xf32, #tpu.memory_space<vmem>>, %arg1: memref<256x2xf32, #tpu.memory_space<vmem>>, %arg2: memref<64x256xf32, #tpu.memory_space<vmem>>, %arg3: memref<1x256xf32, #tpu.memory_space<vmem>>, %arg4: memref<1x128xf32, #tpu.memory_space<vmem>>) attributes {dimension_semantics = [], scalar_prefetch = 0 : i64, scratch_operands = 0 : i64, tpu.core_type = #tpu.core_type<tc>} {
    %c0 = arith.constant 0 : index
    %c0_0 = arith.constant 0 : index
    %0 = vector.load %arg0[%c0, %c0_0] : memref<2x256xf32, #tpu.memory_space<vmem>>, vector<2x256xf32>
    %c0_1 = arith.constant 0 : index
    %c0_2 = arith.constant 0 : index
    %1 = vector.load %arg1[%c0_1, %c0_2] : memref<256x2xf32, #tpu.memory_space<vmem>>, vector<256x2xf32>
    %2 = math.log %0 : vector<2x256xf32>
    %3 = vector.extract_strided_slice %2 {offsets = [0, 0], sizes = [1, 256], strides = [1, 1]} : vector<2x256xf32> to vector<1x256xf32>
    %4 = vector.extract_strided_slice %2 {offsets = [1, 0], sizes = [1, 256], strides = [1, 1]} : vector<2x256xf32> to vector<1x256xf32>
    %5 = arith.subf %3, %4 : vector<1x256xf32>
    %cst = arith.constant 3.12257051 : f32
    %6 = vector.broadcast %cst : f32 to vector<1x256xf32>
    %7 = arith.mulf %5, %6 : vector<1x256xf32>
    %8 = arith.addf %7, %3 : vector<1x256xf32>
    %cst_3 = arith.constant 0.000000e+00 : f32
    %9 = vector.broadcast %cst_3 : f32 to vector<1x256xf32>
    %10 = arith.subf %9, %5 : vector<1x256xf32>
    %cst_4 = arith.constant 3.12257051 : f32
    %11 = vector.broadcast %cst_4 : f32 to vector<1x256xf32>
    %12 = arith.mulf %10, %11 : vector<1x256xf32>
    %13 = arith.addf %12, %4 : vector<1x256xf32>
    %cst_5 = arith.constant dense<0xFF800000> : vector<1xf32>
    %14 = vector.multi_reduction <maximumf>, %8, %cst_5 [1] : vector<1x256xf32> to vector<1xf32>
    %15 = vector.shape_cast %14 : vector<1xf32> to vector<1x1xf32>
    %cst_6 = arith.constant dense<0xFF800000> : vector<1xf32>
    %16 = vector.multi_reduction <maximumf>, %13, %cst_6 [1] : vector<1x256xf32> to vector<1xf32>
    %17 = vector.shape_cast %16 : vector<1xf32> to vector<1x1xf32>
    %18 = vector.broadcast %15 : vector<1x1xf32> to vector<1x256xf32>
    %19 = arith.subf %8, %18 : vector<1x256xf32>
    %20 = math.exp %19 : vector<1x256xf32>
    %cst_7 = arith.constant dense<0.000000e+00> : vector<1xf32>
    %21 = vector.multi_reduction <add>, %20, %cst_7 [1] : vector<1x256xf32> to vector<1xf32>
    %22 = vector.shape_cast %21 : vector<1xf32> to vector<1x1xf32>
    %23 = math.log %22 : vector<1x1xf32>
    %24 = arith.addf %15, %23 : vector<1x1xf32>
    %25 = vector.broadcast %17 : vector<1x1xf32> to vector<1x256xf32>
    %26 = arith.subf %13, %25 : vector<1x256xf32>
    %27 = math.exp %26 : vector<1x256xf32>
    %cst_8 = arith.constant dense<0.000000e+00> : vector<1xf32>
    %28 = vector.multi_reduction <add>, %27, %cst_8 [1] : vector<1x256xf32> to vector<1xf32>
    %29 = vector.shape_cast %28 : vector<1xf32> to vector<1x1xf32>
    %30 = math.log %29 : vector<1x1xf32>
    %31 = arith.addf %17, %30 : vector<1x1xf32>
    %32 = math.log %1 : vector<256x2xf32>
    %33 = vector.extract_strided_slice %32 {offsets = [0, 0], sizes = [256, 1], strides = [1, 1]} : vector<256x2xf32> to vector<256x1xf32>
    %34 = vector.extract_strided_slice %32 {offsets = [0, 1], sizes = [256, 1], strides = [1, 1]} : vector<256x2xf32> to vector<256x1xf32>
    %35 = arith.subf %33, %34 : vector<256x1xf32>
    %cst_9 = arith.constant 6.24514102 : f32
    %36 = vector.broadcast %cst_9 : f32 to vector<256x1xf32>
    %37 = arith.addf %36, %35 : vector<256x1xf32>
    %cst_10 = arith.constant 10.2479668 : f32
    %38 = vector.broadcast %cst_10 : f32 to vector<256x1xf32>
    %39 = arith.mulf %37, %38 : vector<256x1xf32>
    %40 = math.ceil %39 : vector<256x1xf32>
    %cst_11 = arith.constant 6.24514102 : f32
    %41 = vector.broadcast %cst_11 : f32 to vector<256x1xf32>
    %42 = arith.subf %41, %35 : vector<256x1xf32>
    %cst_12 = arith.constant 10.2479668 : f32
    %43 = vector.broadcast %cst_12 : f32 to vector<256x1xf32>
    %44 = arith.mulf %42, %43 : vector<256x1xf32>
    %45 = math.ceil %44 : vector<256x1xf32>
    %46 = tpu.iota {dimensions = array<i32: 1>} : vector<256x128xi32>
    %47 = arith.sitofp %46 : vector<256x128xi32> to vector<256x128xf32>
    %cst_13 = arith.constant 6.400000e+01 : f32
    %48 = vector.broadcast %cst_13 : f32 to vector<256x128xf32>
    %49 = arith.cmpf olt, %47, %48 : vector<256x128xf32>
    %cst_14 = arith.constant 6.400000e+01 : f32
    %50 = vector.broadcast %cst_14 : f32 to vector<256x1xf32>
    %51 = arith.addf %45, %50 : vector<256x1xf32>
    %52 = vector.shape_cast %40 : vector<256x1xf32> to vector<256x1xf32>
    %53 = vector.broadcast %52 : vector<256x1xf32> to vector<256x128xf32>
    %54 = vector.shape_cast %51 : vector<256x1xf32> to vector<256x1xf32>
    %55 = vector.broadcast %54 : vector<256x1xf32> to vector<256x128xf32>
    %56 = arith.select %49, %53, %55 : vector<256x128xi1>, vector<256x128xf32>
    %57 = arith.cmpf oeq, %47, %56 : vector<256x128xf32>
    %58 = arith.extui %57 : vector<256x128xi1> to vector<256x128xi32>
    %59 = arith.sitofp %58 : vector<256x128xi32> to vector<256x128xf32>
    %cst_15 = arith.constant dense<0.000000e+00> : vector<2x128xf32>
    %60 = tpu.matmul %0, %59, %cst_15 {dimension_numbers = #tpu.dot_dimension_numbers<[1], [0], [0], [1], [0, 0, 1, 1], [], []>} : vector<2x256xf32>, vector<256x128xf32>, vector<2x128xf32> -> vector<2x128xf32>
    %61 = tpu.iota {dimensions = array<i32: 0>} : vector<2x64xi32>
    %c0_i32 = arith.constant 0 : i32
    %62 = vector.broadcast %c0_i32 : i32 to vector<2x64xi32>
    %63 = arith.cmpi eq, %61, %62 : vector<2x64xi32>
    %64 = vector.extract_strided_slice %60 {offsets = [0, 0], sizes = [2, 64], strides = [1, 1]} : vector<2x128xf32> to vector<2x64xf32>
    %65 = vector.extract_strided_slice %60 {offsets = [0, 64], sizes = [2, 64], strides = [1, 1]} : vector<2x128xf32> to vector<2x64xf32>
    %66 = arith.select %63, %64, %65 : vector<2x64xi1>, vector<2x64xf32>
    %c0_16 = arith.constant 0 : index
    %c0_17 = arith.constant 0 : index
    %67 = vector.load %arg2[%c0_16, %c0_17] : memref<64x256xf32, #tpu.memory_space<vmem>>, vector<64x256xf32>
    %cst_18 = arith.constant dense<0.000000e+00> : vector<2x256xf32>
    %68 = tpu.matmul %66, %67, %cst_18 {dimension_numbers = #tpu.dot_dimension_numbers<[1], [0], [0], [1], [0, 0, 1, 1], [], []>} : vector<2x64xf32>, vector<64x256xf32>, vector<2x256xf32> -> vector<2x256xf32>
    %69 = vector.extract_strided_slice %68 {offsets = [0, 0], sizes = [2, 128], strides = [1, 1]} : vector<2x256xf32> to vector<2x128xf32>
    %70 = vector.extract_strided_slice %68 {offsets = [0, 128], sizes = [2, 128], strides = [1, 1]} : vector<2x256xf32> to vector<2x128xf32>
    %71 = arith.mulf %69, %69 : vector<2x128xf32>
    %72 = arith.mulf %70, %70 : vector<2x128xf32>
    %73 = arith.subf %71, %72 : vector<2x128xf32>
    %cst_19 = arith.constant 2.000000e+00 : f32
    %74 = vector.broadcast %cst_19 : f32 to vector<2x128xf32>
    %75 = arith.mulf %74, %69 : vector<2x128xf32>
    %76 = arith.mulf %75, %70 : vector<2x128xf32>
    %77 = arith.mulf %73, %73 : vector<2x128xf32>
    %78 = arith.mulf %76, %76 : vector<2x128xf32>
    %79 = arith.subf %77, %78 : vector<2x128xf32>
    %cst_20 = arith.constant 2.000000e+00 : f32
    %80 = vector.broadcast %cst_20 : f32 to vector<2x128xf32>
    %81 = arith.mulf %80, %73 : vector<2x128xf32>
    %82 = arith.mulf %81, %76 : vector<2x128xf32>
    %83 = tpu.concatenate %79, %82 in 1 : vector<2x128xf32>, vector<2x128xf32> -> vector<2x256xf32>
    %c0_21 = arith.constant 0 : index
    %c0_22 = arith.constant 0 : index
    %84 = vector.load %arg3[%c0_21, %c0_22] : memref<1x256xf32, #tpu.memory_space<vmem>>, vector<1x256xf32>
    %85 = vector.broadcast %84 : vector<1x256xf32> to vector<2x256xf32>
    %86 = arith.mulf %83, %85 : vector<2x256xf32>
    %cst_23 = arith.constant dense<0.000000e+00> : vector<2xf32>
    %87 = vector.multi_reduction <add>, %86, %cst_23 [1] : vector<2x256xf32> to vector<2xf32>
    %88 = vector.shape_cast %87 : vector<2xf32> to vector<2x1xf32>
    %89 = tpu.iota {dimensions = array<i32: 1>} : vector<1x128xi32>
    %c0_i32_24 = arith.constant 0 : i32
    %90 = vector.broadcast %c0_i32_24 : i32 to vector<1x128xi32>
    %91 = arith.cmpi eq, %89, %90 : vector<1x128xi32>
    %92 = vector.extract_strided_slice %88 {offsets = [0, 0], sizes = [1, 1], strides = [1, 1]} : vector<2x1xf32> to vector<1x1xf32>
    %cst_25 = arith.constant 0.000000e+00 : f32
    %93 = vector.shape_cast %92 : vector<1x1xf32> to vector<1x1xf32>
    %94 = vector.broadcast %93 : vector<1x1xf32> to vector<1x128xf32>
    %95 = vector.broadcast %cst_25 : f32 to vector<1x128xf32>
    %96 = arith.select %91, %94, %95 : vector<1x128xi1>, vector<1x128xf32>
    %c1_i32 = arith.constant 1 : i32
    %97 = vector.broadcast %c1_i32 : i32 to vector<1x128xi32>
    %98 = arith.cmpi eq, %89, %97 : vector<1x128xi32>
    %99 = vector.extract_strided_slice %88 {offsets = [1, 0], sizes = [1, 1], strides = [1, 1]} : vector<2x1xf32> to vector<1x1xf32>
    %cst_26 = arith.constant 0.000000e+00 : f32
    %100 = vector.shape_cast %99 : vector<1x1xf32> to vector<1x1xf32>
    %101 = vector.broadcast %100 : vector<1x1xf32> to vector<1x128xf32>
    %102 = vector.broadcast %cst_26 : f32 to vector<1x128xf32>
    %103 = arith.select %98, %101, %102 : vector<1x128xi1>, vector<1x128xf32>
    %104 = arith.addf %96, %103 : vector<1x128xf32>
    %c2_i32 = arith.constant 2 : i32
    %105 = vector.broadcast %c2_i32 : i32 to vector<1x128xi32>
    %106 = arith.cmpi eq, %89, %105 : vector<1x128xi32>
    %cst_27 = arith.constant 0.000000e+00 : f32
    %107 = vector.shape_cast %24 : vector<1x1xf32> to vector<1x1xf32>
    %108 = vector.broadcast %107 : vector<1x1xf32> to vector<1x128xf32>
    %109 = vector.broadcast %cst_27 : f32 to vector<1x128xf32>
    %110 = arith.select %106, %108, %109 : vector<1x128xi1>, vector<1x128xf32>
    %111 = arith.addf %104, %110 : vector<1x128xf32>
    %c3_i32 = arith.constant 3 : i32
    %112 = vector.broadcast %c3_i32 : i32 to vector<1x128xi32>
    %113 = arith.cmpi eq, %89, %112 : vector<1x128xi32>
    %cst_28 = arith.constant 0.000000e+00 : f32
    %114 = vector.shape_cast %31 : vector<1x1xf32> to vector<1x1xf32>
    %115 = vector.broadcast %114 : vector<1x1xf32> to vector<1x128xf32>
    %116 = vector.broadcast %cst_28 : f32 to vector<1x128xf32>
    %117 = arith.select %113, %115, %116 : vector<1x128xi1>, vector<1x128xf32>
    %118 = arith.addf %111, %117 : vector<1x128xf32>
    %c0_29 = arith.constant 0 : index
    %c0_30 = arith.constant 0 : index
    %119 = vector.load %arg4[%c0_29, %c0_30] : memref<1x128xf32, #tpu.memory_space<vmem>>, vector<1x128xf32>
    tpu.vector_store %arg4[%c0_29, %c0_30], %118 {strides = array<i32>} : memref<1x128xf32, #tpu.memory_space<vmem>>, vector<1x128xf32>,
    return
  }
}

</mosaic_0001>

<bundles_post_ra>
// kernel: _forward_core.1
= control target key start
LH: loop header
LB: loop body
LE: loop exit
PB: predicated region body
PF: predicated region fallthrough
CT: control target
= control target key end

     0   :  { %s1332_s23 = smov 127   ;;  %vm67_vm0 = vcmask 1040384   ;;  %s1957_s1 = inlined_call_operand.vmem [shape: f32[256,2], index: 1, kind: input, shape index: {}]   ;;  %s1958_s0 = inlined_call_operand.vmem [shape: f32[2,256], index: 0, kind: input, shape index: {}]   ;;  %s1959_s2 = inlined_call_operand.vmem [shape: f32[64,256], index: 2, kind: input, shape index: {}]   ;;  %s1960_s3 = inlined_call_operand.vmem [shape: f32[1,256], index: 3, kind: input, shape index: {}]   ;;  %s1961_s4 = inlined_call_operand.vmem [shape: f32[1,128], index: 4, kind: output, shape index: {}]  }
   0x1   :  { %v20_v0 = vld [vmem:[%s1957_s1 + $0x10] sm:$0xff]  ;;  %v18_v1 = vld [vmem:[%s1957_s1] sm:$0xff]  ;;  %v19_v3 = vld [vmem:[%s1957_s1 + $0x8] sm:$0xff] }
   0x2   :  { %1258 = vlog2.f32 %v20_v0  ;;  %v17_v2 = vld [vmem:[%s1958_s0] sm:$0xf]  ;;  %v21_v12 = vld [vmem:[%s1957_s1 + $0x18] sm:$0xff]  ;;  %v31_v20 = vld [vmem:[%s1957_s1 + $0x68] sm:$0xff] }
   0x3   :  { %1260 = vlog2.f32 %v18_v1  ;;  %1028 = vst [vmem:[#allocation1] ss:$4 sm:$0xff] %v17_v2  ;;  %v22_v9 = vld [vmem:[%s1957_s1 + $0x20] sm:$0xff]  ;;  %v33_v15 = vld [vmem:[%s1957_s1 + $0x78] sm:$0xff]  ;;  %v48_v33 = vld [vmem:[%s1957_s1 + $0xf0] sm:$0xff] }
   0x4   :  { %1262 = vlog2.f32 %v19_v3  ;;  %v49_v23 = vld [vmem:[%s1957_s1 + $0xf8] sm:$0xff]  ;;  %v46_v40 = vld [vmem:[%s1957_s1 + $0xe0] sm:$0xff]  ;;  %v32_v51 = vld [vmem:[%s1957_s1 + $0x70] sm:$0xff] }
   0x5   :  { %1264 = vlog2.f32 %v17_v2  ;;  %v28_v52 = vld [vmem:[%s1957_s1 + $0x50] sm:$0xff]  ;;  %v47_v54 = vld [vmem:[%s1957_s1 + $0xe8] sm:$0xff]  ;;  %v30_v56 = vld [vmem:[%s1957_s1 + $0x60] sm:$0xff] }
   0x6   :  { %1266 = vlog2.f32 %v22_v9  ;;  %v43_v57 = vld [vmem:[%s1957_s1 + $0xc8] sm:$0xff]  ;;  %v29_v62 = vld [vmem:[%s1957_s1 + $0x58] sm:$0xff] }
   0x7   :  { %1268 = vlog2.f32 %v21_v12  ;;  %v45_v2 = vld [vmem:[%s1957_s1 + $0xd8] sm:$0xff] }
   0x8   :  { %v1259_v4 = vpop.eup %1258  ;;  %1270 = vlog2.f32 %v33_v15 }
   0x9   :  { %v1261_v5 = vpop.eup %1260  ;;  %v1374_v6 = vmul.f32 0.6931472, %v1259_v4  ;;  %1272 = vlog2.f32 %v31_v20  ;;  %v44_v4 = vld [vmem:[%s1957_s1 + $0xd0] sm:$0xff]  ;;  %v42_v20 = vld [vmem:[%s1957_s1 + $0xc0] sm:$0xff] }
   0xa   :  { %v1376_v7 = vmul.f32 0.6931472, %v1261_v5  ;;  %v1263_v8 = vpop.eup %1262  ;;  %1274 = vlog2.f32 %v49_v23  ;;  %v41_v23 = vld [vmem:[%s1957_s1 + $0xb8] sm:$0xff] }
   0xb   :  { %227 = vrot.lane.b32.xlu0 %v1374_v6, %s1332_s23  ;;  %v1265_v10 = vpop.eup %1264  ;;  %v1385_v11 = vmul.f32 0.6931472, %v1263_v8  ;;  %1276 = vlog2.f32 %v48_v33 }
   0xc   :  { %223 = vrot.lane.b32.xlu2 %v1376_v7, %s1332_s23  ;;  %v51_v13 = vmul.f32 0.6931472, %v1265_v10  ;;  %v1267_v14 = vpop.eup %1266  ;;  %1278 = vlog2.f32 %v46_v40  ;;  %v27_v10 = vld [vmem:[%s1957_s1 + $0x48] sm:$0xff] }
   0xd   :  { %v1269_v17 = vpop.eup %1268  ;;  %v1395_v18 = vmul.f32 0.6931472, %v1267_v14  ;;  %1280 = vlog2.f32 %v28_v52 }
   0xe   :  { %v53_v16 = vrot.slane %v51_v13, 7  ;;  %v1397_v19 = vmul.f32 0.6931472, %v1269_v17  ;;  %v1271_v22 = vpop.eup %1270  ;;  %1282 = vlog2.f32 %v32_v51  ;;  %v25_v17 = vld [vmem:[%s1957_s1 + $0x38] sm:$0xff] }
   0xf   :  { %v1409_v25 = vmul.f32 0.6931472, %v1271_v22  ;;  %v1273_v26 = vpop.eup %1272  ;;  %1284 = vlog2.f32 %v30_v56  ;;  %v36_v56 = vld [vmem:[%s1957_s1 + $0x90] sm:$0xff] }
  0x10   :  { %v54_v21 = vrot.slane %v53_v16, 2  ;;  %229 = vrot.lane.b32.xlu1 %v1397_v19, %s1332_s23  ;;  %v1411_v28 = vmul.f32 0.6931472, %v1273_v26  ;;  %v1275_v29 = vpop.eup %1274  ;;  %1286 = vlog2.f32 %v43_v57  ;;  %v24_v26 = vld [vmem:[%s1957_s1 + $0x30] sm:$0xff] }
  0x11   :  { %v1419_v32 = vmul.f32 0.6931472, %v1275_v29  ;;  %v1277_v41 = vpop.eup %1276  ;;  %1288 = vlog2.f32 %v47_v54  ;;  %v35_v54 = vld [vmem:[%s1957_s1 + $0x88] sm:$0xff] }
  0x12   :  { %v56_v24 = vsub.f32 %v51_v13, %v54_v21  ;;  %v1435_v43 = vmul.f32 0.6931472, %v1277_v41  ;;  %v1279_v46 = vpop.eup %1278  ;;  %1290 = vlog2.f32 %v29_v62 }
  0x13   :  { %v1443_v49 = vmul.f32 0.6931472, %v1279_v46  ;;  %v1281_v53 = vpop.eup %1280  ;;  %1292 = vlog2.f32 %v45_v2 }
  0x14   :  { %225 = vrot.lane.b32.xlu2 %v1385_v11, %s1332_s23  ;;  %v57_v27 = vmul.f32 3.1225705, %v56_v24  ;;  %v59_v31 = vsub.f32 0.0, %v56_v24  ;;  %v1456_v55 = vmul.f32 0.6931472, %v1281_v53  ;;  %v1283_v58 = vpop.eup %1282  ;;  %1294 = vlog2.f32 %v44_v4  ;;  %v40_v24 = vld [vmem:[%s1957_s1 + $0xb0] sm:$0xff] }
  0x15   :  { %v1466_v59 = vmul.f32 0.6931472, %v1283_v58  ;;  %v1285_v60 = vpop.eup %1284  ;;  %1296 = vlog2.f32 %v27_v10  ;;  %v37_v53 = vld [vmem:[%s1957_s1 + $0x98] sm:$0xff] }
  0x16   :  { %v1417_v30 = vadd.f32 %v57_v27, %v51_v13  ;;  %v60_v36 = vmul.f32 3.1225705, %v59_v31  ;;  %v1287_v61 = vpop.eup %1286  ;;  %v1473_v63 = vmul.f32 0.6931472, %v1285_v60  ;;  %v26_v13 = vld [vmem:[%s1957_s1 + $0x40] sm:$0xff] }
  0x17   :  { %v1289_v0 = vpop.eup %1288  ;;  %v1475_v1 = vmul.f32 0.6931472, %v1287_v61  ;;  %1298 = vlog2.f32 %v26_v13 }
  0x18   :  { %249 = vrot.lane.b32.xlu1 %v1411_v28, %s1332_s23  ;;  %v63_v34 = vperm.slane %v1417_v30, 0  ;;  %v64_v35 = vperm.slane %v1417_v30, 2  ;;  %v1430_v39 = vadd.f32 %v60_v36, %v54_v21  ;;  %v1484_v3 = vmul.f32 0.6931472, %v1289_v0  ;;  %v1291_v5 = vpop.eup %1290 }
  0x19   :  { %v1293_v8 = vpop.eup %1292  ;;  %v1496_v12 = vmul.f32 0.6931472, %v1291_v5  ;;  %1300 = vlog2.f32 %v25_v17  ;;  %v34_v5 = vld [vmem:[%s1957_s1 + $0x80] sm:$0xff] }
  0x1a   :  { %v68_v37 = vsel %vm67_vm0, %v63_v34, -inf  ;;  %v69_v38 = vsel %vm67_vm0, %v64_v35, -inf  ;;  %v74_v44 = vperm.slane %v1430_v39, 0  ;;  %v75_v45 = vperm.slane %v1430_v39, 2  ;;  %v1295_v14 = vpop.eup %1294 }
  0x1b   :  { %v70_v42 = vmax.f32 %v68_v37, %v69_v38  ;;  %v1491_v9 = vmul.f32 0.6931472, %v1293_v8  ;;  %v1297_v15 = vpop.eup %1296  ;;  %v1513_v21 = vmul.f32 0.6931472, %v1295_v14  ;;  %1302 = vlog2.f32 %v42_v20  ;;  %v23_v37 = vld [vmem:[%s1957_s1 + $0x28] sm:$0xff] }
  0x1c   :  { %231 = vrot.lane.b32.xlu2 %v1395_v18, %s1332_s23  ;;  %v78_v47 = vsel %vm67_vm0, %v74_v44, -inf  ;;  %v79_v48 = vsel %vm67_vm0, %v75_v45, -inf  ;;  %v1505_v16 = vmul.f32 0.6931472, %v1297_v15  ;;  %1304 = vlog2.f32 %v40_v24  ;;  %v38_v44 = vld [vmem:[%s1957_s1 + $0xa0] sm:$0xff]  ;;  %v39_v45 = vld [vmem:[%s1957_s1 + $0xa8] sm:$0xff] }
  0x1d   :  { %v80_v50 = vmax.f32 %v78_v47, %v79_v48  ;;  %v1299_v27 = vpop.eup %1298  ;;  %1306 = vlog2.f32 %v24_v26  ;;  %v1333_v47 = vmov 0   ;;  %s1336_s1 = smov 64  }
  0x1e   :  { %1308 = vlog2.f32 %v41_v23  ;;  %v1532_v34 = vmul.f32 0.6931472, %v1299_v27  ;;  %1257 = vset.pattern.permute.xlu0 %v1333_v47  ;;  %1256 = vset.pattern.permute.xlu1 %v1333_v47 }
  0x1f   :  { %v1301_v29 = vpop.eup %1300  ;;  %1310 = vlog2.f32 %v23_v37  ;;  %1255 = vset.pattern.permute.xlu2 %v1333_v47 }
  0x20   :  { %279 = vrot.lane.b32.xlu1 %v1443_v49, %s1332_s23  ;;  %v1530_v33 = vmul.f32 0.6931472, %v1301_v29  ;;  %1312 = vlog2.f32 %v38_v44 }
  0x21   :  { %v1303_v31 = vpop.eup %1302  ;;  %1314 = vlog2.f32 %v39_v45 }
  0x22   :  { %v1534_v35 = vmul.f32 0.6931472, %v1303_v31  ;;  %v1305_v38 = vpop.eup %1304  ;;  %1316 = vlog2.f32 %v35_v54 }
  0x23   :  { %v1307_v40 = vpop.eup %1306  ;;  %1318 = vlog2.f32 %v36_v56 }
  0x24   :  { %253 = vrot.lane.b32.xlu2 %v1409_v25, %s1332_s23  ;;  %v1309_v41 = vpop.eup %1308  ;;  %v1555_v46 = vmul.f32 0.6931472, %v1307_v40  ;;  %1320 = vlog2.f32 %v37_v53 }
  0x25   :  { %v1557_v48 = vmul.f32 0.6931472, %v1309_v41  ;;  %v1311_v51 = vpop.eup %1310  ;;  %1322 = vlog2.f32 %v34_v5 }
  0x26   :  { %v1313_v52 = vpop.eup %1312  ;;  %v1580_v61 = vmul.f32 0.6931472, %v1311_v51 }
  0x27   :  { %v1315_v57 = vpop.eup %1314  ;;  %v1576_v58 = vmul.f32 0.6931472, %v1313_v52 }
  0x28   :  { %243 = vrot.lane.b32.xlu1 %v1456_v55, %s1332_s23  ;;  %v1578_v60 = vmul.f32 0.6931472, %v1315_v57  ;;  %v1317_v0 = vpop.eup %1316 }
  0x29   :  { %v1319_v2 = vpop.eup %1318  ;;  %v1592_v10 = vmul.f32 0.6931472, %v1317_v0 }
  0x2a   :  { %v1321_v8 = vpop.eup %1320  ;;  %v1594_v14 = vmul.f32 0.6931472, %v1319_v2 }
  0x2b   :  { %v1596_v15 = vmul.f32 0.6931472, %v1321_v8  ;;  %v1323_v26 = vpop.eup %1322 }
  0x2c   :  { %285 = vrot.lane.b32.xlu2 %v1419_v32, %s1332_s23  ;;  %v1605_v37 = vmul.f32 0.6931472, %v1323_v26 }
  0x30   :  { %273 = vrot.lane.b32.xlu1 %v1475_v1, %s1332_s23 }
  0x34   :  { %283 = vrot.lane.b32.xlu2 %v1435_v43, %s1332_s23 }
  0x35   :  { %71 = vmax.xlane.f32.xlu0 %v70_v42  ;;  %v1547_v42 = vmul.f32 0.6931472, %v1305_v38 }
  0x38   :  { %237 = vrot.lane.b32.xlu1 %v1530_v33, %s1332_s23 }
  0x3c   :  { %247 = vrot.lane.b32.xlu2 %v1473_v63, %s1332_s23 }
  0x3d   :  { %81 = vmax.xlane.f32.xlu0 %v80_v50 }
  0x40   :  { %267 = vrot.lane.b32.xlu1 %v1547_v42, %s1332_s23 }
  0x44   :  { %277 = vrot.lane.b32.xlu2 %v1491_v9, %s1332_s23 }
  0x48   :  { %263 = vrot.lane.b32.xlu1 %v1576_v58, %s1332_s23 }
  0x4c   :  { %241 = vrot.lane.b32.xlu2 %v1505_v16, %s1332_s23 }
  0x50   :  { %257 = vrot.lane.b32.xlu1 %v1592_v10, %s1332_s23 }
  0x51   :  { %251 = vrot.lane.b32.xlu0 %v1466_v59, %s1332_s23 }
  0x54   :  { %271 = vrot.lane.b32.xlu2 %v1534_v35, %s1332_s23 }
  0x59   :  { %281 = vrot.lane.b32.xlu0 %v1484_v3, %s1332_s23 }
  0x5c   :  { %235 = vrot.lane.b32.xlu2 %v1555_v46, %s1332_s23 }
  0x61   :  { %245 = vrot.lane.b32.xlu0 %v1496_v12, %s1332_s23 }
  0x64   :  { %265 = vrot.lane.b32.xlu2 %v1578_v60, %s1332_s23 }
  0x66   :  { %v1515_v22 = vpop.permute.xlu2 %223 }
  0x69   :  { %275 = vrot.lane.b32.xlu0 %v1513_v21, %s1332_s23 }
  0x6c   :  { %259 = vrot.lane.b32.xlu2 %v1594_v14, %s1332_s23 }
  0x6e   :  { %v1536_v36 = vpop.permute.xlu2 %225 }
  0x71   :  { %239 = vrot.lane.b32.xlu0 %v1532_v34, %s1332_s23 }
  0x76   :  { %v1559_v50 = vpop.permute.xlu2 %231 }
  0x79   :  { %269 = vrot.lane.b32.xlu0 %v1557_v48, %s1332_s23 }
  0x7e   :  { %v254_v62 = vpop.permute.xlu2 %253 }
  0x7f   :  { %v334_v4 = vsub.f32 %v1409_v25, %v254_v62 }
  0x81   :  { %233 = vrot.lane.b32.xlu0 %v1580_v61, %s1332_s23  ;;  %v366_v13 = vadd.f32 6.245141, %v334_v4  ;;  %v462_v23 = vsub.f32 6.245141, %v334_v4 }
  0x82   :  { %v1607_v40 = vpop.permute.xlu1 %229 }
  0x83   :  { %v398_v20 = vmul.f32 10.247967, %v366_v13  ;;  %v494_v31 = vmul.f32 10.247967, %v462_v23 }
  0x85   :  { %v430_v27 = vceil.f32 %v398_v20  ;;  %v526_v44 = vceil.f32 %v494_v31 }
  0x86   :  { %v286_v17 = vpop.permute.xlu2 %285 }
  0x87   :  { %v350_v25 = vsub.f32 %v1419_v32, %v286_v17  ;;  %656 = vperm.xlu2 %1255, %v430_v27   ;;  %v562_v52 = vadd.f32 64.0, %v526_v44  ;;  %v1613_v27 = vpop.permute.xlu0 %227 }
  0x89   :  { %261 = vrot.lane.b32.xlu0 %v1596_v15, %s1332_s23  ;;  %v382_v24 = vadd.f32 6.245141, %v350_v25  ;;  %v478_v62 = vsub.f32 6.245141, %v350_v25 }
  0x8a   :  { %v250_v56 = vpop.permute.xlu1 %249 }
  0x8b   :  { %v414_v29 = vmul.f32 10.247967, %v382_v24  ;;  %v332_v57 = vsub.f32 %v1411_v28, %v250_v56  ;;  %v510_v4 = vmul.f32 10.247967, %v478_v62 }
  0x8d   :  { %v446_v38 = vceil.f32 %v414_v29  ;;  %v460_v5 = vsub.f32 6.245141, %v332_v57  ;;  %v542_v17 = vceil.f32 %v510_v4 }
  0x8e   :  { %v284_v41 = vpop.permute.xlu2 %283 }
  0x8f   :  { %v349_v32 = vsub.f32 %v1435_v43, %v284_v41  ;;  %736 = vperm.xlu1 %1256, %v446_v38   ;;  %v364_v43 = vadd.f32 6.245141, %v332_v57  ;;  %v492_v20 = vmul.f32 10.247967, %v460_v5  ;;  %v578_v24 = vadd.f32 64.0, %v542_v17 }
  0x91   :  { %255 = vrot.lane.b32.xlu0 %v1605_v37, %s1332_s23  ;;  %v381_v45 = vadd.f32 6.245141, %v349_v32  ;;  %v477_v47 = vsub.f32 6.245141, %v349_v32  ;;  %v396_v2 = vmul.f32 10.247967, %v364_v43  ;;  %v524_v23 = vceil.f32 %v492_v20 }
  0x92   :  { %v280_v28 = vpop.permute.xlu1 %279 }
  0x93   :  { %v413_v51 = vmul.f32 10.247967, %v381_v45  ;;  %v509_v54 = vmul.f32 10.247967, %v477_v47  ;;  %v428_v8 = vceil.f32 %v396_v2  ;;  %v560_v26 = vadd.f32 64.0, %v524_v23 }
  0x94   :  { %v347_v25 = vsub.f32 %v1443_v49, %v280_v28 }
  0x95   :  { %v445_v53 = vceil.f32 %v413_v51  ;;  %v541_v0 = vceil.f32 %v509_v54 }
  0x96   :  { %v379_v29 = vadd.f32 6.245141, %v347_v25  ;;  %v248_v38 = vpop.permute.xlu2 %247 }
  0x97   :  { %731 = vperm.xlu2 %1255, %v445_v53   ;;  %v577_v13 = vadd.f32 64.0, %v541_v0  ;;  %v331_v57 = vsub.f32 %v1473_v63, %v248_v38 }
  0x98   :  { %v411_v31 = vmul.f32 10.247967, %v379_v29 }
  0x99   :  { %816 = vperm.xlu0 %1257, %v562_v52   ;;  %v459_v4 = vsub.f32 6.245141, %v331_v57 }
  0x9a   :  { %v443_v32 = vceil.f32 %v411_v31 }
  0x9e   :  { %v278_v44 = vpop.permute.xlu2 %277 }
  0x9f   :  { %646 = vperm.xlu2 %1255, %v428_v8   ;;  %v346_v17 = vsub.f32 %v1491_v9, %v278_v44 }
  0xa1   :  { %891 = vperm.xlu0 %1257, %v577_v13   ;;  %v363_v13 = vadd.f32 6.245141, %v331_v57  ;;  %v474_v31 = vsub.f32 6.245141, %v346_v17 }
  0xa3   :  { %v395_v63 = vmul.f32 10.247967, %v363_v13  ;;  %v506_v9 = vmul.f32 10.247967, %v474_v31 }
  0xa6   :  { %v1620_v47 = vpop.permute.xlu2 %241 }
  0xa7   :  { %896 = vperm.xlu2 %1255, %v578_v24  }
  0xa8   :  { %v1616_v41 = vpop.xlane.xlu0 %71 }
  0xa9   :  { %806 = vperm.xlu0 %1257, %v560_v26   ;;  %v491_v26 = vmul.f32 10.247967, %v459_v4  ;;  %v475_v4 = vsub.f32 6.245141, %v347_v25 }
  0xae   :  { %v1623_v56 = vpop.permute.xlu2 %271 }
  0xb0   :  { %v1618_v45 = vpop.xlane.xlu0 %81 }
  0xb1   :  { %721 = vperm.xlu0 %1257, %v443_v32   ;;  %v523_v32 = vceil.f32 %v491_v26 }
  0xb6   :  { %v1628_v20 = vpop.permute.xlu2 %235 }
  0xbe   :  { %v1632_v57 = vpop.permute.xlu2 %265 }
  0xc3   :  { %v252_v51 = vpop.permute.xlu0 %251 }
  0xc4   :  { %v333_v52 = vsub.f32 %v1466_v59, %v252_v51  ;;  %v244_v59 = vpop.permute.xlu1 %243 }
  0xc5   :  { %v329_v44 = vsub.f32 %v1456_v55, %v244_v59 }
  0xc6   :  { %v365_v53 = vadd.f32 6.245141, %v333_v52  ;;  %v461_v38 = vsub.f32 6.245141, %v333_v52  ;;  %v1634_v59 = vpop.permute.xlu2 %259 }
  0xc7   :  { %v457_v52 = vsub.f32 6.245141, %v329_v44 }
  0xc8   :  { %v397_v54 = vmul.f32 10.247967, %v365_v53  ;;  %v427_v53 = vceil.f32 %v395_v63  ;;  %v361_v63 = vadd.f32 6.245141, %v329_v44 }
  0xca   :  { %v429_v49 = vceil.f32 %v397_v54 }
  0xcb   :  { %v282_v62 = vpop.permute.xlu0 %281 }
  0xcc   :  { %v348_v0 = vsub.f32 %v1484_v3, %v282_v62  ;;  %651 = vperm.xlu1 %1256, %v429_v49   ;;  %v274_v49 = vpop.permute.xlu1 %273  ;;  %v493_v62 = vmul.f32 10.247967, %v461_v38 }
  0xce   :  { %v380_v43 = vadd.f32 6.245141, %v348_v0  ;;  %v476_v2 = vsub.f32 6.245141, %v348_v0 }
  0xd0   :  { %v412_v5 = vmul.f32 10.247967, %v380_v43  ;;  %v508_v8 = vmul.f32 10.247967, %v476_v2  ;;  %v378_v43 = vadd.f32 6.245141, %v346_v17 }
  0xd1   :  { %v559_v2 = vadd.f32 64.0, %v523_v32 }
  0xd2   :  { %v444_v23 = vceil.f32 %v412_v5  ;;  %v540_v24 = vceil.f32 %v508_v8  ;;  %v538_v5 = vceil.f32 %v506_v9  ;;  %v525_v8 = vceil.f32 %v493_v62 }
  0xd3   :  { %v246_v28 = vpop.permute.xlu0 %245  ;;  %v410_v13 = vmul.f32 10.247967, %v378_v43 }
  0xd4   :  { %v330_v29 = vsub.f32 %v1496_v12, %v246_v28  ;;  %726 = vperm.xlu1 %1256, %v444_v23   ;;  %v576_v3 = vadd.f32 64.0, %v540_v24  ;;  %v507_v23 = vmul.f32 10.247967, %v475_v4  ;;  %v489_v24 = vmul.f32 10.247967, %v457_v52  ;;  %v238_v55 = vpop.permute.xlu1 %237 }
  0xd5   :  { %v574_v26 = vadd.f32 64.0, %v538_v5  ;;  %v442_v28 = vceil.f32 %v410_v13  ;;  %v343_v13 = vsub.f32 %v1534_v35, %v1623_v56 }
  0xd6   :  { %v362_v51 = vadd.f32 6.245141, %v330_v29  ;;  %886 = vperm.xlu2 %1255, %v576_v3   ;;  %v561_v3 = vadd.f32 64.0, %v525_v8  ;;  %v539_v25 = vceil.f32 %v507_v23  ;;  %v458_v38 = vsub.f32 6.245141, %v330_v29 }
  0xd7   :  { %v521_v32 = vceil.f32 %v489_v24  ;;  %v1647_v29 = vsub.f32 %v1505_v16, %v1620_v47 }
  0xd8   :  { %v394_v54 = vmul.f32 10.247967, %v362_v51  ;;  %v1638_v51 = vsub.f32 %v1475_v1, %v274_v49  ;;  %v490_v9 = vmul.f32 10.247967, %v458_v38 }
  0xd9   :  { %v557_v44 = vadd.f32 64.0, %v521_v32  ;;  %v456_v52 = vsub.f32 6.245141, %v1647_v29  ;;  %v543_v32 = vlaneseq }
  0xda   :  { %v426_v0 = vceil.f32 %v394_v54  ;;  %v376_v62 = vadd.f32 6.245141, %v1638_v51  ;;  %v522_v49 = vceil.f32 %v490_v9 }
  0xdb   :  { %v276_v12 = vpop.permute.xlu0 %275 }
  0xdc   :  { %641 = vperm.xlu1 %1256, %v427_v53   ;;  %636 = vperm.xlu0 %1257, %v426_v0   ;;  %v345_v17 = vsub.f32 %v1513_v21, %v276_v12  ;;  %v393_v53 = vmul.f32 10.247967, %v361_v63  ;;  %v575_v0 = vadd.f32 64.0, %v539_v25  ;;  %v1641_v43 = vpop.permute.xlu1 %267  ;;  %v408_v4 = vmul.f32 10.247967, %v376_v62 }
  0xdd   :  { %v558_v24 = vadd.f32 64.0, %v522_v49  ;;  %v488_v63 = vmul.f32 10.247967, %v456_v52  ;;  %v471_v25 = vsub.f32 6.245141, %v343_v13 }
  0xde   :  { %801 = vperm.xlu2 %1255, %v559_v2   ;;  %v473_v54 = vsub.f32 6.245141, %v345_v17  ;;  %v425_v2 = vceil.f32 %v393_v53  ;;  %v377_v23 = vadd.f32 6.245141, %v345_v17  ;;  %v440_v16 = vceil.f32 %v408_v4 }
  0xdf   :  { %v520_v53 = vceil.f32 %v488_v63  ;;  %v503_v56 = vmul.f32 10.247967, %v471_v25 }
  0xe0   :  { %v505_v12 = vmul.f32 10.247967, %v473_v54  ;;  %v326_v54 = vsub.f32 %v1530_v33, %v238_v55  ;;  %v1334_v33 = vmov 269488144  }
  0xe1   :  { %v1643_v21 = vpop.permute.xlu2 %656  ;;  %v535_v49 = vceil.f32 %v503_v56  ;;  %v85_v55 = vunpack.c.l.s4 %v1334_v33  ;;  %v1335_v56 = vmov 1.0  }
  0xe2   :  { %v537_v8 = vceil.f32 %v505_v12  ;;  %v454_v4 = vsub.f32 6.245141, %v326_v54 }
  0xe3   :  { %v240_v31 = vpop.permute.xlu0 %239  ;;  %v86_v25 = vunpack.c.0.s8 %v85_v55 }
  0xe4   :  { %811 = vperm.xlu1 %1256, %v561_v3   ;;  %876 = vperm.xlu0 %1257, %v574_v26   ;;  %v1650_v5 = vsub.f32 %v1532_v34, %v240_v31  ;;  %v1656_v26 = vpop.permute.xlu1 %263  ;;  %v573_v3 = vadd.f32 64.0, %v537_v8  ;;  %v409_v31 = vmul.f32 10.247967, %v377_v23  ;;  %v486_v23 = vmul.f32 10.247967, %v454_v4 }
  0xe6   :  { %716 = vperm.xlu2 %1255, %v442_v28   ;;  %v359_v47 = vadd.f32 6.245141, %v1650_v5  ;;  %v441_v35 = vceil.f32 %v409_v31 }
  0xe8   :  { %v391_v38 = vmul.f32 10.247967, %v359_v47 }
  0xea   :  { %v423_v17 = vceil.f32 %v391_v38 }
  0xeb   :  { %v270_v1 = vpop.permute.xlu0 %269 }
  0xec   :  { %881 = vperm.xlu1 %1256, %v575_v0   ;;  %791 = vperm.xlu0 %1257, %v557_v44   ;;  %v1661_v9 = vpop.permute.xlu1 %257  ;;  %v1666_v0 = vand.u32 127, %v543_v32  ;;  %v375_v44 = vadd.f32 6.245141, %v343_v13  ;;  %v1675_v63 = vsub.f32 %v1557_v48, %v270_v1 }
  0xee   :  { %631 = vperm.xlu2 %1255, %v425_v2   ;;  %v556_v2 = vadd.f32 64.0, %v520_v53  ;;  %v1671_v52 = vcvt.s32.f32 %v1666_v0  ;;  %v407_v8 = vmul.f32 10.247967, %v375_v44  ;;  %v518_v53 = vceil.f32 %v486_v23 }
  0xef   :  { %v470_v48 = vsub.f32 6.245141, %v1675_v63 }
  0xf0   :  { %vm546_vm1 = vcmp.lt.f32.partialorder %v1671_v52, 64.0  ;;  %v554_v44 = vadd.f32 64.0, %v518_v53 }
  0xf1   :  { %v1658_v28 = vpop.permute.xlu2 %731 }
  0xf3   :  { %v234_v34 = vpop.permute.xlu0 %233 }
  0xf4   :  { %796 = vperm.xlu1 %1256, %v558_v24   ;;  %706 = vperm.xlu0 %1257, %v440_v16   ;;  %v571_v16 = vadd.f32 64.0, %v535_v49  ;;  %v439_v24 = vceil.f32 %v407_v8  ;;  %v502_v49 = vmul.f32 10.247967, %v470_v48  ;;  %v1696_v8 = vsub.f32 %v1580_v61, %v234_v34 }
  0xf5   :  { %v340_v61 = vsub.f32 %v1578_v60, %v1632_v57 }
  0xf6   :  { %871 = vperm.xlu2 %1255, %v573_v3   ;;  %v358_v3 = vadd.f32 6.245141, %v326_v54  ;;  %v356_v34 = vadd.f32 6.245141, %v1696_v8 }
  0xf8   :  { %v390_v1 = vmul.f32 10.247967, %v358_v3  ;;  %v468_v3 = vsub.f32 6.245141, %v340_v61 }
  0xf9   :  { %v1663_v62 = vpop.permute.xlu2 %646 }
  0xfa   :  { %v422_v4 = vceil.f32 %v390_v1  ;;  %v500_v57 = vmul.f32 10.247967, %v468_v3 }
  0xfb   :  { %v1668_v12 = vpop.permute.xlu0 %261 }
  0xfc   :  { %711 = vperm.xlu1 %1256, %v441_v35   ;;  %621 = vperm.xlu0 %1257, %v423_v17   ;;  %v1684_v35 = vsub.f32 %v1547_v42, %v1641_v43  ;;  %v87_v17 = vperm.slane %v1616_v41, %v86_v25 }
  0xfe   :  { %786 = vperm.xlu2 %1255, %v556_v2   ;;  %v373_v54 = vadd.f32 6.245141, %v1684_v35  ;;  %v1692_v2 = vsub.f32 %v1555_v46, %v1628_v20  ;;  %v89_v42 = vsub.f32 %v1417_v30, %v87_v17  ;;  %v534_v46 = vceil.f32 %v502_v49 }
  0xff   :  { %v109_v30 = vperm.slane %v1618_v45, %v86_v25  ;;  %v372_v17 = vadd.f32 6.245141, %v340_v61 }
 0x100   :  { %v405_v33 = vmul.f32 10.247967, %v373_v54  ;;  %v453_v23 = vsub.f32 6.245141, %v1692_v2  ;;  %v90_v20 = vmul.f32 1.442695, %v89_v42 }
 0x101   :  { %v737_v47 = vpop.permute.xlu1 %736  ;;  %v897_v13 = vpop.permute.xlu2 %896  ;;  %v404_v42 = vmul.f32 10.247967, %v372_v17 }
 0x102   :  { %v930_v31 = vsel %vm546_vm1, %v737_v47, %v897_v13  ;;  %v485_v47 = vmul.f32 10.247967, %v453_v23  ;;  %v570_v13 = vadd.f32 64.0, %v534_v46  ;;  %1324 = vpow2.f32 %v90_v20 }
 0x103   :  { %v1679_v38 = vpop.permute.xlu0 %255  ;;  %vm962_vm2 = vcmp.eq.f32.partialorder %v1671_v52, %v930_v31  ;;  %v388_v31 = vmul.f32 10.247967, %v356_v34  ;;  %v436_v20 = vceil.f32 %v404_v42  ;;  %v360_v42 = vadd.f32 6.245141, %v1647_v29 }
 0x104   :  { %861 = vperm.xlu0 %1257, %v571_v16   ;;  %1232 = vmatpush.msk.msra.mxu1 %vm962_vm2, %v1335_v56  ;;  %v437_v16 = vceil.f32 %v405_v33  ;;  %v517_v25 = vceil.f32 %v485_v47 }
 0x105   :  { %v420_v48 = vceil.f32 %v388_v31 }
 0x106   :  { %701 = vperm.xlu2 %1255, %v439_v24   ;;  %v111_v24 = vsub.f32 %v1430_v39, %v109_v30  ;;  %v323_v39 = vsub.f32 %v1395_v18, %v1559_v50  ;;  %v553_v54 = vadd.f32 64.0, %v517_v25  ;;  %v1720_v18 = vsub.f32 %v1596_v15, %v1668_v12 }
 0x107   :  { %v1724_v50 = vsub.f32 %v1576_v58, %v1656_v26  ;;  %v1732_v58 = vsub.f32 %v1397_v19, %v1607_v40 }
 0x108   :  { %v112_v60 = vmul.f32 1.442695, %v111_v24  ;;  %v1325_v1 = vpop.eup %1324  ;;  %v355_v30 = vadd.f32 6.245141, %v323_v39 }
 0x109   :  { %v93_v49 = vperm.slane %v1325_v1, 0  ;;  %v467_v24 = vsub.f32 6.245141, %v1724_v50 }
 0x10a   :  { %1326 = vpow2.f32 %v112_v60  ;;  %v1736_v60 = vsub.f32 %v1374_v6, %v1613_v27 }
 0x10b   :  { %v817_v43 = vpop.permute.xlu0 %816  ;;  %v97_v33 = vsel %vm67_vm0, %v93_v49, 0.0 }
 0x10c   :  { %776 = vperm.xlu0 %1257, %v554_v44   ;;  %v914_v55 = vsel %vm546_vm1, %v1643_v21, %v817_v43  ;;  %v532_v44 = vceil.f32 %v500_v57  ;;  %v450_v57 = vsub.f32 6.245141, %v1732_v58  ;;  %v353_v19 = vadd.f32 6.245141, %v1736_v60 }
 0x10d   :  { %vm946_vm3 = vcmp.eq.f32.partialorder %v1671_v52, %v914_v55 }
 0x10e   :  { %616 = vperm.xlu2 %1255, %v422_v4   ;;  %1216 = vmatpush.msk.msra.mxu0 %vm946_vm3, %v1335_v56  ;;  %v451_v4 = vsub.f32 6.245141, %v323_v39  ;;  %v568_v43 = vadd.f32 64.0, %v532_v44  ;;  %v482_v40 = vmul.f32 10.247967, %v450_v57 }
 0x10f   :  { %v385_v44 = vmul.f32 10.247967, %v353_v19 }
 0x110   :  { %v1327_v23 = vpop.eup %1326  ;;  %v483_v46 = vmul.f32 10.247967, %v451_v4  ;;  %v514_v49 = vceil.f32 %v482_v40 }
 0x111   :  { %v115_v34 = vperm.slane %v1327_v23, 0  ;;  %v417_v27 = vceil.f32 %v385_v44  ;;  %v374_v44 = vadd.f32 6.245141, %v1675_v63 }
 0x112   :  { %v515_v47 = vceil.f32 %v483_v46  ;;  %v392_v46 = vmul.f32 10.247967, %v360_v42 }
 0x113   :  { %v892_v21 = vpop.permute.xlu0 %891  ;;  %v119_v3 = vsel %vm67_vm0, %v115_v34, 0.0 }
 0x114   :  { %691 = vperm.xlu0 %1257, %v437_v16   ;;  %v929_v53 = vsel %vm546_vm1, %v1658_v28, %v892_v21  ;;  %v94_v28 = vperm.slane %v1325_v1, 2  ;;  %v116_v16 = vperm.slane %v1327_v23, 2  ;;  %v370_v21 = vadd.f32 6.245141, %v1720_v18 }
 0x115   :  { %vm961_vm4 = vcmp.eq.f32.partialorder %v1671_v52, %v929_v53  ;;  %v551_v12 = vadd.f32 64.0, %v515_v47  ;;  %v499_v53 = vmul.f32 10.247967, %v467_v24 }
 0x116   :  { %856 = vperm.xlu2 %1255, %v570_v13   ;;  %1233 = vmatpush.msk.msra.mxu1 %vm961_vm4, %v1335_v56  ;;  %v98_v55 = vsel %vm67_vm0, %v94_v28, 0.0  ;;  %v387_v13 = vmul.f32 10.247967, %v355_v30  ;;  %v120_v15 = vsel %vm67_vm0, %v116_v16, 0.0  ;;  %v402_v26 = vmul.f32 10.247967, %v370_v21 }
 0x117   :  { %v99_v61 = vadd.f32 %v98_v55, %v97_v33  ;;  %v121_v25 = vadd.f32 %v120_v15, %v119_v3  ;;  %v531_v39 = vceil.f32 %v499_v53  ;;  %v320_v28 = vsub.f32 %v1385_v11, %v1536_v36 }
 0x118   :  { %v419_v31 = vceil.f32 %v387_v13  ;;  %v434_v1 = vceil.f32 %v402_v26  ;;  %v472_v30 = vsub.f32 6.245141, %v1638_v51  ;;  %v424_v16 = vceil.f32 %v392_v46 }
 0x119   :  { %v448_v33 = vsub.f32 6.245141, %v320_v28  ;;  %v352_v47 = vadd.f32 6.245141, %v320_v28  ;;  %v1748_v11 = vsub.f32 %v1605_v37, %v1679_v38  ;;  %v1752_v36 = vsub.f32 %v1592_v10, %v1661_v9 }
 0x11a   :  { %v504_v29 = vmul.f32 10.247967, %v472_v30  ;;  %v455_v51 = vsub.f32 6.245141, %v1650_v5  ;;  %v1763_v26 = vsub.f32 %v1376_v7, %v1515_v22 }
 0x11b   :  { %v367_v37 = vadd.f32 6.245141, %v1748_v11  ;;  %v464_v38 = vsub.f32 6.245141, %v1752_v36 }
 0x11c   :  { %606 = vperm.xlu0 %1257, %v420_v48   ;;  %v337_v48 = vsub.f32 %v1594_v14, %v1634_v59  ;;  %v550_v59 = vadd.f32 64.0, %v514_v49  ;;  %v536_v10 = vceil.f32 %v504_v29 }
 0x11d   :  { %v399_v53 = vmul.f32 10.247967, %v367_v37 }
 0x11e   :  { %771 = vperm.xlu2 %1255, %v553_v54   ;;  %v465_v17 = vsub.f32 6.245141, %v337_v48  ;;  %v567_v54 = vadd.f32 64.0, %v531_v39  ;;  %v369_v4 = vadd.f32 6.245141, %v337_v48  ;;  %v572_v57 = vadd.f32 64.0, %v536_v10 }
 0x11f   :  { %v447_v39 = vsub.f32 6.245141, %v1763_v26  ;;  %v431_v19 = vceil.f32 %v399_v53  ;;  %v466_v53 = vsub.f32 6.245141, %v1720_v18 }
 0x120   :  { %v497_v6 = vmul.f32 10.247967, %v465_v17  ;;  %v401_v55 = vmul.f32 10.247967, %v369_v4 }
 0x121   :  { %v479_v7 = vmul.f32 10.247967, %v447_v39 }
 0x122   :  { %v529_v14 = vceil.f32 %v497_v6  ;;  %v433_v34 = vceil.f32 %v401_v55 }
 0x123   :  { %v511_v42 = vceil.f32 %v479_v7  ;;  %v463_v7 = vsub.f32 6.245141, %v1748_v11 }
 0x124   :  { %846 = vperm.xlu0 %1257, %v568_v43   ;;  %v807_v43 = vpop.permute.xlu0 %806 }
 0x125   :  { %v912_v28 = vsel %vm546_vm1, %v1663_v62, %v807_v43  ;;  %v547_v62 = vadd.f32 64.0, %v511_v42 }
 0x126   :  { %100 = vadd.xlane.f32.xlu1 %v99_v61  ;;  %686 = vperm.xlu2 %1255, %v436_v20   ;;  %v565_v20 = vadd.f32 64.0, %v529_v14  ;;  %v480_v61 = vmul.f32 10.247967, %v448_v33  ;;  %vm944_vm7 = vcmp.eq.f32.partialorder %v1671_v52, %v912_v28  ;;  %v357_v33 = vadd.f32 6.245141, %v1692_v2 }
 0x127   :  { %v469_v2 = vsub.f32 6.245141, %v1684_v35 }
 0x128   :  { %v512_v21 = vceil.f32 %v480_v61  ;;  %v389_v46 = vmul.f32 10.247967, %v357_v33 }
 0x12a   :  { %v548_v9 = vadd.f32 64.0, %v512_v21  ;;  %v421_v30 = vceil.f32 %v389_v46 }
 0x12c   :  { %761 = vperm.xlu0 %1257, %v551_v12   ;;  %v722_v13 = vpop.permute.xlu0 %721  ;;  %v384_v12 = vmul.f32 10.247967, %v352_v47 }
 0x12e   :  { %122 = vadd.xlane.f32.xlu1 %v121_v25  ;;  %601 = vperm.xlu2 %1255, %v419_v31   ;;  %v487_v31 = vmul.f32 10.247967, %v455_v51  ;;  %v416_v5 = vceil.f32 %v384_v12  ;;  %v496_v25 = vmul.f32 10.247967, %v464_v38  ;;  %v371_v38 = vadd.f32 6.245141, %v1724_v50 }
 0x12f   :  { %v368_v50 = vadd.f32 6.245141, %v1752_v36 }
 0x130   :  { %v887_v24 = vpop.permute.xlu2 %886  ;;  %v528_v40 = vceil.f32 %v496_v25  ;;  %v403_v10 = vmul.f32 10.247967, %v371_v38 }
 0x132   :  { %v564_v22 = vadd.f32 64.0, %v528_v40 }
 0x134   :  { %676 = vperm.xlu0 %1257, %v434_v1   ;;  %v519_v1 = vceil.f32 %v487_v31  ;;  %v435_v31 = vceil.f32 %v403_v10 }
 0x136   :  { %841 = vperm.xlu2 %1255, %v567_v54   ;;  %v555_v49 = vadd.f32 64.0, %v519_v1 }
 0x138   :  { %v802_v17 = vpop.permute.xlu2 %801 }
 0x13c   :  { %591 = vperm.xlu0 %1257, %v417_v27   ;;  %v406_v27 = vmul.f32 10.247967, %v374_v44  ;;  %v351_v44 = vadd.f32 6.245141, %v1763_v26 }
 0x13e   :  { %v652_v23 = vpop.permute.xlu1 %651  ;;  %756 = vperm.xlu2 %1255, %v550_v59   ;;  %v438_v55 = vceil.f32 %v406_v27  ;;  %v383_v18 = vmul.f32 10.247967, %v351_v44  ;;  %v495_v27 = vmul.f32 10.247967, %v463_v7 }
 0x140   :  { %v717_v14 = vpop.permute.xlu2 %716 }
 0x144   :  { %831 = vperm.xlu0 %1257, %v565_v20  }
 0x146   :  { %v727_v3 = vpop.permute.xlu1 %726  ;;  %671 = vperm.xlu2 %1255, %v433_v34  }
 0x147   :  { %v928_v15 = vsel %vm546_vm1, %v727_v3, %v887_v24  ;;  %626 = vperm.xlu1 %1256, %v424_v16   ;;  %v501_v16 = vmul.f32 10.247967, %v469_v2 }
 0x148   :  { %vm960_vm5 = vcmp.eq.f32.partialorder %v1671_v52, %v928_v15  ;;  %v632_v61 = vpop.permute.xlu2 %631 }
 0x149   :  { %1234 = vmatpush.msk.msra.mxu1 %vm960_vm5, %v1335_v56  ;;  %v533_v35 = vceil.f32 %v501_v16 }
 0x14b   :  { %v569_v3 = vadd.f32 64.0, %v533_v35 }
 0x14c   :  { %746 = vperm.xlu0 %1257, %v548_v9   ;;  %v354_v9 = vadd.f32 6.245141, %v1732_v58  ;;  %v400_v58 = vmul.f32 10.247967, %v368_v50 }
 0x14e   :  { %v642_v48 = vpop.permute.xlu1 %641  ;;  %586 = vperm.xlu2 %1255, %v416_v5   ;;  %v637_v54 = vpop.permute.xlu0 %636  ;;  %v386_v5 = vmul.f32 10.247967, %v354_v9 }
 0x14f   :  { %866 = vperm.xlu1 %1256, %v572_v57   ;;  %v911_v63 = vsel %vm546_vm1, %v642_v48, %v802_v17  ;;  %v498_v57 = vmul.f32 10.247967, %v466_v53  ;;  %v449_v48 = vsub.f32 6.245141, %v1736_v60 }
 0x150   :  { %vm943_vm8 = vcmp.eq.f32.partialorder %v1671_v52, %v911_v63  ;;  %v872_v51 = vpop.permute.xlu2 %871  ;;  %v418_v25 = vceil.f32 %v386_v5 }
 0x151   :  { %v530_v1 = vceil.f32 %v498_v57  ;;  %v481_v39 = vmul.f32 10.247967, %v449_v48 }
 0x153   :  { %v513_v40 = vceil.f32 %v481_v39 }
 0x154   :  { %661 = vperm.xlu0 %1257, %v431_v19   ;;  %v566_v19 = vadd.f32 64.0, %v530_v1 }
 0x155   :  { %v549_v17 = vadd.f32 64.0, %v513_v40 }
 0x156   :  { %v812_v6 = vpop.permute.xlu1 %811  ;;  %826 = vperm.xlu2 %1255, %v564_v22   ;;  %v877_v59 = vpop.permute.xlu0 %876 }
 0x157   :  { %v913_v4 = vsel %vm546_vm1, %v652_v23, %v812_v6  ;;  %781 = vperm.xlu1 %1256, %v555_v49   ;;  %v926_v43 = vsel %vm546_vm1, %v717_v14, %v877_v59  ;;  %v432_v49 = vceil.f32 %v400_v58  ;;  %v415_v6 = vceil.f32 %v383_v18 }
 0x158   :  { %vm945_vm6 = vcmp.eq.f32.partialorder %v1671_v52, %v913_v4  ;;  %vm958_vm10 = vcmp.eq.f32.partialorder %v1671_v52, %v926_v43  ;;  %v787_v22 = vpop.permute.xlu2 %786  ;;  %v527_v4 = vceil.f32 %v495_v27 }
 0x159   :  { %1217 = vmatpush.msk.msra.mxu0 %vm945_vm6, %v1335_v56 }
 0x15a   :  { %v563_v63 = vadd.f32 64.0, %v527_v4  ;;  %v1029_v4 = vld.sshfl [vmem:[#allocation1] sm:$0xff pattern:$0x73625140] }
 0x15b   :  { %1218 = vmatpush.msk.msra.mxu0 %vm944_vm7, %v1335_v56 }
 0x15d   :  { %1219 = vmatpush.msk.msra.mxu0 %vm943_vm8, %v1335_v56 }
 0x15e   :  { %v882_v23 = vpop.permute.xlu1 %881  ;;  %741 = vperm.xlu2 %1255, %v547_v62   ;;  %v792_v34 = vpop.permute.xlu0 %791 }
 0x15f   :  { %v927_v20 = vsel %vm546_vm1, %v722_v13, %v882_v23  ;;  %696 = vperm.xlu1 %1256, %v438_v55   ;;  %v909_v47 = vsel %vm546_vm1, %v632_v61, %v792_v34  ;;  %v452_v13 = vsub.f32 6.245141, %v1696_v8 }
 0x160   :  { %vm959_vm9 = vcmp.eq.f32.partialorder %v1671_v52, %v927_v20  ;;  %vm941_vm12 = vcmp.eq.f32.partialorder %v1671_v52, %v909_v47  ;;  %v702_v36 = vpop.permute.xlu2 %701 }
 0x161   :  { %1235 = vmatpush.msk.msra.mxu1 %vm959_vm9, %v1335_v56  ;;  %v484_v24 = vmul.f32 10.247967, %v452_v13 }
 0x163   :  { %1236 = vmatpush.msk.msra.mxu1 %vm958_vm10, %v1335_v56  ;;  %v516_v12 = vceil.f32 %v484_v24 }
 0x165   :  { %v552_v37 = vadd.f32 64.0, %v516_v12 }
 0x166   :  { %v797_v29 = vpop.permute.xlu1 %796 }
 0x167   :  { %v910_v21 = vsel %vm546_vm1, %v637_v54, %v797_v29  ;;  %611 = vperm.xlu1 %1256, %v421_v30   ;;  %v707_v54 = vpop.permute.xlu0 %706 }
 0x168   :  { %vm942_vm11 = vcmp.eq.f32.partialorder %v1671_v52, %v910_v21  ;;  %v617_v26 = vpop.permute.xlu2 %616 }
 0x169   :  { %1220 = vmatpush.msk.msra.mxu0 %vm942_vm11, %v1335_v56 }
 0x16b   :  { %1221 = vmatpush.msk.msra.mxu0 %vm941_vm12, %v1335_v56 }
 0x16e   :  { %v712_v15 = vpop.permute.xlu1 %711 }
 0x16f   :  { %v925_v8 = vsel %vm546_vm1, %v712_v15, %v872_v51  ;;  %851 = vperm.xlu1 %1256, %v569_v3   ;;  %v622_v60 = vpop.permute.xlu0 %621 }
 0x170   :  { %vm957_vm13 = vcmp.eq.f32.partialorder %v1671_v52, %v925_v8  ;;  %v857_v55 = vpop.permute.xlu2 %856 }
 0x171   :  { %1237 = vmatpush.msk.msra.mxu1 %vm957_vm13, %v1335_v56 }
 0x177   :  { %766 = vperm.xlu1 %1256, %v552_v37   ;;  %v862_v42 = vpop.permute.xlu0 %861 }
 0x178   :  { %v923_v23 = vsel %vm546_vm1, %v702_v36, %v862_v42  ;;  %v772_v20 = vpop.permute.xlu2 %771 }
 0x179   :  { %vm955_vm0 = vcmp.eq.f32.partialorder %v1671_v52, %v923_v23  ;;  %v1087_v23 = vld [vmem:[%s1959_s2 + $0x30] sm:$0xff] }
 0x17f   :  { %681 = vperm.xlu1 %1256, %v435_v31   ;;  %v777_v59 = vpop.permute.xlu0 %776 }
 0x180   :  { %v906_v30 = vsel %vm546_vm1, %v617_v26, %v777_v59  ;;  %v687_v29 = vpop.permute.xlu2 %686  ;;  %v1030_v26 = vld.sshfl [vmem:[#allocation1 + $0x8] sm:$0xff pattern:$0x73625140]  ;;  %v1095_v59 = vld [vmem:[%s1959_s2 + $0x70] sm:$0xff] }
 0x181   :  { %vm938_vm3 = vcmp.eq.f32.partialorder %v1671_v52, %v906_v30  ;;  %1109 = vmatpush.msra.mxu2 %v1095_v59  ;;  %v1083_v30 = vld [vmem:[%s1959_s2 + $0x10] sm:$0xff] }
 0x187   :  { %596 = vperm.xlu1 %1256, %v418_v25   ;;  %v692_v62 = vpop.permute.xlu0 %691 }
 0x188   :  { %v602_v24 = vpop.permute.xlu2 %601 }
 0x18f   :  { %836 = vperm.xlu1 %1256, %v566_v19   ;;  %v607_v34 = vpop.permute.xlu0 %606 }
 0x190   :  { %v842_v8 = vpop.permute.xlu2 %841 }
 0x197   :  { %751 = vperm.xlu1 %1256, %v549_v17   ;;  %v847_v13 = vpop.permute.xlu0 %846 }
 0x198   :  { %v920_v15 = vsel %vm546_vm1, %v687_v29, %v847_v13  ;;  %v757_v31 = vpop.permute.xlu2 %756  ;;  %v1081_v29 = vld [vmem:[%s1959_s2] sm:$0xff]  ;;  %v1082_v13 = vld [vmem:[%s1959_s2 + $0x8] sm:$0xff] }
 0x199   :  { %v1810_v28 = vpop.xlane.xlu1 %100  ;;  %vm952_vm7 = vcmp.eq.f32.partialorder %v1671_v52, %v920_v15 }
 0x19a   :  { %1328 = vlog2.f32 %v1810_v28 }
 0x19f   :  { %666 = vperm.xlu1 %1256, %v432_v49   ;;  %v762_v3 = vpop.permute.xlu0 %761 }
 0x1a0   :  { %v903_v10 = vsel %vm546_vm1, %v602_v24, %v762_v3  ;;  %v672_v1 = vpop.permute.xlu2 %671 }
 0x1a1   :  { %v1812_v14 = vpop.xlane.xlu1 %122  ;;  %vm935_vm9 = vcmp.eq.f32.partialorder %v1671_v52, %v903_v10 }
 0x1a2   :  { %1330 = vlog2.f32 %v1812_v14 }
 0x1a7   :  { %581 = vperm.xlu1 %1256, %v415_v6   ;;  %v677_v37 = vpop.permute.xlu0 %676 }
 0x1a8   :  { %v587_v17 = vpop.permute.xlu2 %586 }
 0x1af   :  { %821 = vperm.xlu1 %1256, %v563_v63   ;;  %v592_v25 = vpop.permute.xlu0 %591 }
 0x1b0   :  { %v827_v18 = vpop.permute.xlu2 %826 }
 0x1b7   :  { %v832_v39 = vpop.permute.xlu0 %831 }
 0x1b8   :  { %v917_v40 = vsel %vm546_vm1, %v672_v1, %v832_v39 }
 0x1b9   :  { %v627_v33 = vpop.permute.xlu1 %626  ;;  %vm949_vm13 = vcmp.eq.f32.partialorder %v1671_v52, %v917_v40 }
 0x1ba   :  { %v908_v11 = vsel %vm546_vm1, %v627_v33, %v787_v22  ;;  %v1096_v33 = vld [vmem:[%s1959_s2 + $0x78] sm:$0xff] }
 0x1bb   :  { %vm940_vm14 = vcmp.eq.f32.partialorder %v1671_v52, %v908_v11  ;;  %v1093_v11 = vld [vmem:[%s1959_s2 + $0x60] sm:$0xff]  ;;  %1129 = vmatpush.msra.mxu3 %v1096_v33 }
 0x1bc   :  { %1222 = vmatpush.msk.msra.mxu0 %vm940_vm14, %v1335_v56  ;;  %1110 = vmatpush.msra.mxu2 %v1093_v11 }
 0x1bf   :  { %v747_v58 = vpop.permute.xlu0 %746 }
 0x1c0   :  { %v900_v44 = vsel %vm546_vm1, %v587_v17, %v747_v58 }
 0x1c1   :  { %v867_v43 = vpop.permute.xlu1 %866 }
 0x1c2   :  { %v924_v46 = vsel %vm546_vm1, %v707_v54, %v867_v43  ;;  %v1090_v43 = vld [vmem:[%s1959_s2 + $0x48] sm:$0xff] }
 0x1c3   :  { %vm956_vm15 = vcmp.eq.f32.partialorder %v1671_v52, %v924_v46  ;;  %v1088_v46 = vld [vmem:[%s1959_s2 + $0x38] sm:$0xff] }
 0x1c4   :  { %1238 = vmatpush.msk.msra.mxu1 %vm956_vm15, %v1335_v56  ;;  %vm932_vm15 = vcmp.eq.f32.partialorder %v1671_v52, %v900_v44 }
 0x1c6   :  { %1239 = vmatpush.msk.msra.mxu1 %vm955_vm0, %v1335_v56 }
 0x1c7   :  { %v662_v36 = vpop.permute.xlu0 %661 }
 0x1c9   :  { %v782_v2 = vpop.permute.xlu1 %781 }
 0x1ca   :  { %v907_v61 = vsel %vm546_vm1, %v622_v60, %v782_v2  ;;  %v742_v60 = vpop.permute.xlu2 %741  ;;  %v1086_v2 = vld [vmem:[%s1959_s2 + $0x28] sm:$0xff] }
 0x1cb   :  { %vm939_vm2 = vcmp.eq.f32.partialorder %v1671_v52, %v907_v61  ;;  %v1084_v61 = vld [vmem:[%s1959_s2 + $0x18] sm:$0xff] }
 0x1cc   :  { %1223 = vmatpush.msk.msra.mxu0 %vm939_vm2, %v1335_v56 }
 0x1ce   :  { %1224 = vmatpush.msk.msra.mxu0 %vm938_vm3, %v1335_v56 }
 0x1d1   :  { %v697_v16 = vpop.permute.xlu1 %696 }
 0x1d2   :  { %v922_v47 = vsel %vm546_vm1, %v697_v16, %v857_v55  ;;  %v1092_v55 = vld [vmem:[%s1959_s2 + $0x58] sm:$0xff] }
 0x1d3   :  { %vm954_vm4 = vcmp.eq.f32.partialorder %v1671_v52, %v922_v47 }
 0x1d4   :  { %1240 = vmatpush.msk.msra.mxu1 %vm954_vm4, %v1335_v56  ;;  %vm1097_vm4 = vcmask 523264  }
 0x1d9   :  { %v612_v21 = vpop.permute.xlu1 %611 }
 0x1da   :  { %v905_v35 = vsel %vm546_vm1, %v612_v21, %v772_v20  ;;  %v1085_v20 = vld [vmem:[%s1959_s2 + $0x20] sm:$0xff]  ;;  %v1074_v21 = vshrl.u32 %v543_v32, 7 }
 0x1db   :  { %vm937_vm5 = vcmp.eq.f32.partialorder %v1671_v52, %v905_v35 }
 0x1dc   :  { %1225 = vmatpush.msk.msra.mxu0 %vm937_vm5, %v1335_v56  ;;  %vm1159_vm5 = vcmask 1041408  }
 0x1e1   :  { %v852_v51 = vpop.permute.xlu1 %851 }
 0x1e2   :  { %v921_v12 = vsel %vm546_vm1, %v692_v62, %v852_v51  ;;  %v1089_v62 = vld [vmem:[%s1959_s2 + $0x40] sm:$0xff] }
 0x1e3   :  { %vm953_vm6 = vcmp.eq.f32.partialorder %v1671_v52, %v921_v12 }
 0x1e4   :  { %1241 = vmatpush.msk.msra.mxu1 %vm953_vm6, %v1335_v56  ;;  %vm1167_vm6 = vcmp.eq.s32.totalorder %v1666_v0, 1 }
 0x1e6   :  { %1242 = vmatpush.msk.msra.mxu1 %vm952_vm7, %v1335_v56  ;;  %vm1165_vm7 = vcmp.eq.s32.totalorder %v1666_v0, 0 }
 0x1e9   :  { %v767_v38 = vpop.permute.xlu1 %766 }
 0x1ea   :  { %v904_v9 = vsel %vm546_vm1, %v607_v34, %v767_v38 }
 0x1eb   :  { %vm936_vm8 = vcmp.eq.f32.partialorder %v1671_v52, %v904_v9 }
 0x1ec   :  { %1226 = vmatpush.msk.msra.mxu0 %vm936_vm8, %v1335_v56  ;;  %vm1173_vm8 = vcmp.eq.s32.totalorder %v1666_v0, 2 }
 0x1ee   :  { %1227 = vmatpush.msk.msra.mxu0 %vm935_vm9, %v1335_v56  ;;  %vm1176_vm9 = vcmp.eq.s32.totalorder %v1666_v0, 3 }
 0x1f1   :  { %v682_v5 = vpop.permute.xlu1 %681 }
 0x1f2   :  { %v919_v53 = vsel %vm546_vm1, %v682_v5, %v842_v8 }
 0x1f3   :  { %vm951_vm10 = vcmp.eq.f32.partialorder %v1671_v52, %v919_v53 }
 0x1f4   :  { %1243 = vmatpush.msk.msra.mxu1 %vm951_vm10, %v1335_v56 }
 0x1f9   :  { %v597_v57 = vpop.permute.xlu1 %596 }
 0x1fa   :  { %v902_v48 = vsel %vm546_vm1, %v597_v57, %v757_v31 }
 0x1fb   :  { %vm934_vm11 = vcmp.eq.f32.partialorder %v1671_v52, %v902_v48 }
 0x1fc   :  { %1228 = vmatpush.msk.msra.mxu0 %vm934_vm11, %v1335_v56 }
 0x201   :  { %v837_v19 = vpop.permute.xlu1 %836 }
 0x202   :  { %v918_v50 = vsel %vm546_vm1, %v677_v37, %v837_v19  ;;  %v1151_v37 = vld [vmem:[%s1960_s3] sm:$0x3] }
 0x203   :  { %vm950_vm12 = vcmp.eq.f32.partialorder %v1671_v52, %v918_v50  ;;  %v1153_v9 = vperm.slane %v1151_v37, 0  ;;  %v1154_v53 = vperm.slane %v1151_v37, 1  ;;  %v1329_v50 = vpop.eup %1328 }
 0x204   :  { %1244 = vmatpush.msk.msra.mxu1 %vm950_vm12, %v1335_v56  ;;  %v1331_v17 = vpop.eup %1330  ;;  %v103_v58 = vmul.f32 0.6931472, %v1329_v50 }
 0x206   :  { %1245 = vmatpush.msk.msra.mxu1 %vm949_vm13, %v1335_v56 }
 0x209   :  { %v752_v54 = vpop.permute.xlu1 %751 }
 0x20a   :  { %v901_v49 = vsel %vm546_vm1, %v592_v25, %v752_v54  ;;  %v125_v54 = vmul.f32 0.6931472, %v1331_v17 }
 0x20b   :  { %vm933_vm14 = vcmp.eq.f32.partialorder %v1671_v52, %v901_v49  ;;  %v104_v49 = vadd.f32 %v103_v58, %v1616_v41 }
 0x20c   :  { %1229 = vmatpush.msk.msra.mxu0 %vm933_vm14, %v1335_v56 }
 0x20e   :  { %1230 = vmatpush.msk.msra.mxu0 %vm932_vm15, %v1335_v56 }
 0x211   :  { %v667_v7 = vpop.permute.xlu1 %666 }
 0x212   :  { %v916_v22 = vsel %vm546_vm1, %v667_v7, %v827_v18 }
 0x213   :  { %vm948_vm0 = vcmp.eq.f32.partialorder %v1671_v52, %v916_v22  ;;  %v126_v22 = vadd.f32 %v125_v54, %v1618_v45 }
 0x214   :  { %1246 = vmatpush.msk.msra.mxu1 %vm948_vm0, %v1335_v56 }
 0x219   :  { %v582_v6 = vpop.permute.xlu1 %581 }
 0x21a   :  { %v899_v27 = vsel %vm546_vm1, %v582_v6, %v742_v60  ;;  %v1174_v60 = vsel %vm1173_vm8, %v104_v49, 0.0 }
 0x21b   :  { %vm931_vm2 = vcmp.eq.f32.partialorder %v1671_v52, %v899_v27  ;;  %v1177_v27 = vsel %vm1176_vm9, %v126_v22, 0.0 }
 0x21c   :  { %1231 = vmatpush.msk.msra.mxu0 %vm931_vm2, %v1335_v56 }
 0x21d   :  { %1049 = vmatmul.f32.vlgmr.msra.gmra.mxu0 %v1029_v4 }
 0x221   :  { %v822_v42 = vpop.permute.xlu1 %821 }
 0x222   :  { %v915_v63 = vsel %vm546_vm1, %v662_v36, %v822_v42  ;;  %vm1075_vm1 = vcmp.eq.s32.totalorder %v1074_v21, 0 }
 0x223   :  { %vm947_vm3 = vcmp.eq.f32.partialorder %v1671_v52, %v915_v63  ;;  %v1094_v52 = vld [vmem:[%s1959_s2 + $0x68] sm:$0xff] }
 0x224   :  { %1247 = vmatpush.msk.msra.mxu1 %vm947_vm3, %v1335_v56  ;;  %v1091_v56 = vld [vmem:[%s1959_s2 + $0x50] sm:$0xff]  ;;  %1130 = vmatpush.msra.mxu3 %v1094_v52 }
 0x225   :  { %1069 = vmatmul.f32.vlgmr.msra.gmra.mxu1 %v1030_v26  ;;  %1111 = vmatpush.msra.mxu2 %v1091_v56 }
 0x226   :  { %1131 = vmatpush.msra.mxu3 %v1092_v55 }
 0x227   :  { %1112 = vmatpush.msra.mxu2 %v1089_v62 }
 0x228   :  { %1132 = vmatpush.msra.mxu3 %v1090_v43 }
 0x229   :  { %1113 = vmatpush.msra.mxu2 %v1087_v23 }
 0x22a   :  { %1133 = vmatpush.msra.mxu3 %v1088_v46 }
 0x22b   :  { %1114 = vmatpush.msra.mxu2 %v1085_v20 }
 0x22c   :  { %1134 = vmatpush.msra.mxu3 %v1086_v2 }
 0x22d   :  { %1115 = vmatpush.msra.mxu2 %v1083_v30 }
 0x22e   :  { %1135 = vmatpush.msra.mxu3 %v1084_v61 }
 0x22f   :  { %1116 = vmatpush.msra.mxu2 %v1081_v29 }
 0x230   :  { %1136 = vmatpush.msra.mxu3 %v1082_v13 }
 0x29a   :  { %v1050_v34 = vpop.f32.mrf.mxu0 }
 0x2a2   :  { %v1070_v16 = vpop.f32.mrf.mxu1 }
 0x2a3   :  { %v1071_v47 = vadd.f32 %v1070_v16, %v1050_v34 }
 0x2a5   :  { %1077 = vrot.lane.b32.xlu0 %v1071_v47, %s1336_s1 }
 0x317   :  { %v1078_v35 = vpop.permute.xlu0 %1077 }
 0x318   :  { %v1080_v24 = vsel %vm1075_vm1, %v1071_v47, %v1078_v35 }
 0x319   :  { %1248 = vmatmul.msk.f32.vlgmr.msra.gmra.mxu2 %vm1097_vm4, %v1080_v24  ;;  %1249 = vmatmul.msk.f32.vlgmr.msra.gmra.mxu3 %vm1097_vm4, %v1080_v24 }
 0x39c   :  { %v1118_v3 = vpop.f32.mrf.mxu2  ;;  %v1138_v51 = vpop.f32.mrf.mxu3 }
 0x39d   :  { %v1141_v15 = vmul.f32 %v1118_v3, %v1118_v3  ;;  %v1144_v12 = vmul.f32 2.0, %v1118_v3  ;;  %v1142_v8 = vmul.f32 %v1138_v51, %v1138_v51 }
 0x39f   :  { %v1143_v38 = vsub.f32 %v1141_v15, %v1142_v8  ;;  %v1145_v10 = vmul.f32 %v1144_v12, %v1138_v51 }
 0x3a1   :  { %v1146_v31 = vmul.f32 %v1143_v38, %v1143_v38  ;;  %v1147_v32 = vmul.f32 %v1145_v10, %v1145_v10  ;;  %v1149_v5 = vmul.f32 2.0, %v1143_v38 }
 0x3a3   :  { %v1148_v25 = vsub.f32 %v1146_v31, %v1147_v32  ;;  %v1150_v57 = vmul.f32 %v1149_v5, %v1145_v10 }
 0x3a5   :  { %v1157_v48 = vmul.f32 %v1153_v9, %v1148_v25  ;;  %v1158_v1 = vmul.f32 %v1154_v53, %v1150_v57 }
 0x3a7   :  { %v1160_v39 = vsel %vm1159_vm5, %v1157_v48, 0.0  ;;  %v1161_v19 = vsel %vm1159_vm5, %v1158_v1, 0.0 }
 0x3a8   :  { %v1162_v40 = vadd.f32 %v1161_v19, %v1160_v39 }
 0x3aa   :  { %1163 = vadd.xlane.f32.xlu2 %v1162_v40 }
 0x41d   :  { %v1164_v44 = vpop.xlane.xlu2 %1163 }
 0x41e   :  { %v1168_v18 = vsel %vm1167_vm6, %v1164_v44, 0.0  ;;  %v1166_v28 = vsel %vm1165_vm7, %v1164_v44, 0.0 }
 0x41f   :  { %v1170_v7 = vrot.slane %v1168_v18, 1 }
 0x421   :  { %v1172_v14 = vadd.f32 %v1170_v7, %v1166_v28 }
 0x423   :  { %v1175_v6 = vadd.f32 %v1174_v60, %v1172_v14 }
 0x425   :  { %v1178_v4 = vadd.f32 %v1177_v27, %v1175_v6 }
 0x427   :  { %1179 = vst [vmem:[%s1961_s4] sm:$0x1] %v1178_v4 }

</bundles_post_ra>
